<compile_context>
chip_gen: v7x
topology: tpu7x:2x2x1
jax: 0.10.0
libtpu: 0.0.40
codegen_flags: <defaults>
</compile_context>

<pallas_src>
import jax
import jax.numpy as jnp
import numpy as np
from jax.experimental import pallas as pl
from jax.experimental.pallas import tpu as pltpu


def _round_up(x, m):
    return (x + m - 1) // m * m


def mingru_cell_kernel(x_ref, hprev_ref, wx_ref, wh_ref, b_ref, out_ref):
    """Fused minGRU cell: two accumulating MXU dots + VPU/EUP gating.

    x_ref    : (TB, Ep)     bf16, zero-padded x
    hprev_ref: (TB, Hp)     f32,  zero-padded h_prev
    wx_ref   : (Ep, 2*Hp)   bf16, [W_z_x^T | W_h_x^T], zero-padded
    wh_ref   : (Hp, 2*Hp)   bf16, [W_z_h^T | W_h_h^T], zero-padded
    b_ref    : (1, 2*Hp)    f32,  [b_z | b_h], zero-padded
    out_ref  : (TB, Hp)     f32,  h_t (padded)
    """
    hp = out_ref.shape[-1]
    h_prev = hprev_ref[...]                                   # f32, reused for gating

    # Both gate pre-activations from two MXU GEMMs, f32 accumulation.
    pre = jnp.dot(x_ref[...], wx_ref[...], preferred_element_type=jnp.float32)
    pre += jnp.dot(h_prev.astype(jnp.bfloat16), wh_ref[...],
                   preferred_element_type=jnp.float32)
    pre += b_ref[...]

    # sigmoid(a) = 1 / (1 + exp(-a)): exp on EUP, divide as approx rcp on EUP.
    z_t = pl.reciprocal(1.0 + jnp.exp(-pre[:, :hp]), approx=True)
    h_tilde = jnp.tanh(pre[:, hp:])

    # h_t = (1 - z)*h_prev + z*h_tilde  ==  h_prev + z*(h_tilde - h_prev)
    out_ref[...] = h_prev + z_t * (h_tilde - h_prev)


def init_params(key, input_size, hidden_size):
    """PyTorch-layout params: W (H, E+H), b (H,) for each of linear_z / linear_h."""
    k1, k2, k3, k4 = jax.random.split(key, 4)
    s = 0.1
    return {
        "w_z": jax.random.normal(k1, (hidden_size, input_size + hidden_size), jnp.float32) * s,
        "b_z": jax.random.normal(k2, (hidden_size,), jnp.float32) * s,
        "w_h": jax.random.normal(k3, (hidden_size, input_size + hidden_size), jnp.float32) * s,
        "b_h": jax.random.normal(k4, (hidden_size,), jnp.float32) * s,
    }


def prepare_fused_params(params, input_size, hidden_size, *, gemm_dtype=jnp.bfloat16):
    """One-time param setup: split per-input weights, fuse z/h gates side by side,
    zero-pad to (8,128) tiles and cast to the MXU streaming dtype (bf16)."""
    E, H = input_size, hidden_size
    Ep = _round_up(E, 128)
    Hp = _round_up(H, 128)

    # torch Linear: y = x @ W.T + b, with W of shape (H, E+H) split into x / h parts.
    wz_x, wz_h = params["w_z"][:, :E], params["w_z"][:, E:]
    whh_x, whh_h = params["w_h"][:, :E], params["w_h"][:, E:]

    wx = jnp.zeros((Ep, 2 * Hp), jnp.float32)
    wx = wx.at[:E, :H].set(wz_x.T)                    # x -> z gate block
    wx = wx.at[:E, Hp:Hp + H].set(whh_x.T)            # x -> h_tilde block

    wh = jnp.zeros((Hp, 2 * Hp), jnp.float32)
    wh = wh.at[:H, :H].set(wz_h.T)                    # h_prev -> z gate block
    wh = wh.at[:H, Hp:Hp + H].set(whh_h.T)            # h_prev -> h_tilde block

    bf = jnp.zeros((1, 2 * Hp), jnp.float32)
    bf = bf.at[0, :H].set(params["b_z"])
    bf = bf.at[0, Hp:Hp + H].set(params["b_h"])

    return {"wx": wx.astype(gemm_dtype), "wh": wh.astype(gemm_dtype), "b": bf,
            "Ep": Ep, "Hp": Hp}


def _pad2d(a, rows, cols, dtype=None):
    """Cast (if needed) and zero-pad; no-op when already aligned."""
    if dtype is not None and a.dtype != dtype:
        a = a.astype(dtype)
    pr, pc = rows - a.shape[0], cols - a.shape[1]
    if pr == 0 and pc == 0:
        return a
    return jnp.pad(a, ((0, pr), (0, pc)))


def _choose_batch_tile(B, target):
    """Multiple-of-8 batch tile; big enough to feed the MXU, but keep >=2 grid
    tiles when the batch allows so the 'parallel' axis can use both v7x TCs."""
    tb = min(_round_up(target, 8), _round_up(B, 8))
    if B > 8 and _round_up(B, tb) // tb < 2:
        tb = max(8, _round_up((B + 1) // 2, 8))
    return tb


def _vmem_limit_bytes(tb, Ep, Hp):
    w = 2 * (Ep + Hp) * (2 * Hp)                 # bf16 weights (resident, constant index)
    act = 2 * (tb * Ep * 2 + tb * Hp * 4)        # double-buffered x (bf16) + h_prev (f32)
    out = 2 * (tb * Hp * 4)                      # double-buffered output (f32)
    bias = 2 * (2 * Hp) * 4
    est = w + act + out + bias
    # >= 32 MiB (covers v5e's 16 MiB default scoped limit), <= 64 MiB (v7x physical).
    return int(min(max(32 * 2**20, 2 * est), 64 * 2**20))


def mingru_cell_forward(x, h_prev, fused, *, batch_tile=256):
    """x: (B, E) f32, h_prev: (B, H) f32 -> h_t: (B, H) f32."""
    B, E = x.shape
    H = h_prev.shape[1]
    Ep, Hp = fused["Ep"], fused["Hp"]

    tb = _choose_batch_tile(B, batch_tile)
    Bp = _round_up(B, tb)

    # Glue: pad (only if needed) straight to per-input slabs; no concat materialization.
    x_p = _pad2d(x, Bp, Ep, dtype=jnp.bfloat16)          # streamed to the MXU in bf16
    hprev_p = _pad2d(h_prev, Bp, Hp, dtype=jnp.float32)  # kept f32 for the gate combine

    grid = (Bp // tb,)
    out_p = pl.pallas_call(
        mingru_cell_kernel,
        out_shape=jax.ShapeDtypeStruct((Bp, Hp), jnp.float32),
        grid=grid,
        in_specs=[
            pl.BlockSpec((tb, Ep), lambda i: (i, 0)),        # x tile (bf16)
            pl.BlockSpec((tb, Hp), lambda i: (i, 0)),        # h_prev tile (f32)
            pl.BlockSpec((Ep, 2 * Hp), lambda i: (0, 0)),    # wx, resident across tiles
            pl.BlockSpec((Hp, 2 * Hp), lambda i: (0, 0)),    # wh, resident across tiles
            pl.BlockSpec((1, 2 * Hp), lambda i: (0, 0)),     # bias, resident
        ],
        out_specs=pl.BlockSpec((tb, Hp), lambda i: (i, 0)),
        compiler_params=pltpu.CompilerParams(
            dimension_semantics=("parallel",),               # batch tiles -> megacore
            vmem_limit_bytes=_vmem_limit_bytes(tb, Ep, Hp)),
    )(x_p, hprev_p, fused["wx"], fused["wh"], fused["b"])

    return out_p[:B, :H]


def reference_forward(x, h_prev, params):
    """Pure-JAX (f32) replica of the PyTorch MinGRUCell.forward."""
    combined = jnp.concatenate([x, h_prev], axis=1)
    z_t = jax.nn.sigmoid(combined @ params["w_z"].T + params["b_z"])
    h_tilde = jnp.tanh(combined @ params["w_h"].T + params["b_h"])
    return (1.0 - z_t) * h_prev + z_t * h_tilde


if __name__ == "__main__":
    # Small shapes consistent with MinGRUCell.forward: x (B, E), h_prev (B, H).
    batch, input_size, hidden_size = 2, 16, 32

    key = jax.random.PRNGKey(0)
    k_x, k_h, k_par = jax.random.split(key, 3)

    x = jax.random.normal(k_x, (batch, input_size), jnp.float32)
    h_prev = jax.random.normal(k_h, (batch, hidden_size), jnp.float32)
    params = init_params(k_par, input_size, hidden_size)
    fused = prepare_fused_params(params, input_size, hidden_size)

    h_t = mingru_cell_forward(x, h_prev, fused)
    h_t = jax.block_until_ready(h_t)

    ref = reference_forward(x, h_prev, params)
    # Tolerance loosened vs. the f32 reference because GEMM operands are bf16
    # (f32 accumulation) and the sigmoid divide uses the approx EUP reciprocal.
    np.testing.assert_allclose(np.asarray(h_t), np.asarray(ref), rtol=2e-2, atol=2e-2)
    assert h_t.shape == (batch, hidden_size)

    print("KERNEL_OK")
</pallas_src>

<mosaic_0001>
module attributes {stable_mosaic.version = 11 : i64} {
  func.func @mingru_cell_kernel(%arg0: i32, %arg1: memref<8x128xbf16, #tpu.memory_space<vmem>>, %arg2: memref<8x128xf32, #tpu.memory_space<vmem>>, %arg3: memref<128x256xbf16, #tpu.memory_space<vmem>>, %arg4: memref<128x256xbf16, #tpu.memory_space<vmem>>, %arg5: memref<1x256xf32, #tpu.memory_space<vmem>>, %arg6: memref<8x128xf32, #tpu.memory_space<vmem>>) attributes {dimension_semantics = [#tpu.dimension_semantics<parallel>], iteration_bounds = array<i64: 1>, scalar_prefetch = 0 : i64, scratch_operands = 0 : i64, tpu.core_type = #tpu.core_type<tc>, window_params = [{transform_indices = @transform_0, window_bounds = array<i64: 8, 128>}, {transform_indices = @transform_1, window_bounds = array<i64: 8, 128>}, {pipeline_mode = #tpu.pipeline_mode<synchronous>, transform_indices = @transform_2, window_bounds = array<i64: 128, 256>}, {pipeline_mode = #tpu.pipeline_mode<synchronous>, transform_indices = @transform_3, window_bounds = array<i64: 128, 256>}, {pipeline_mode = #tpu.pipeline_mode<synchronous>, transform_indices = @transform_4, window_bounds = array<i64: 1, 256>}, {transform_indices = @transform_5, window_bounds = array<i64: 8, 128>}]} {
    %c0 = arith.constant 0 : index
    %c0_0 = arith.constant 0 : index
    %0 = vector.load %arg2[%c0, %c0_0] : memref<8x128xf32, #tpu.memory_space<vmem>>, vector<8x128xf32>
    %c0_1 = arith.constant 0 : index
    %c0_2 = arith.constant 0 : index
    %1 = vector.load %arg1[%c0_1, %c0_2] : memref<8x128xbf16, #tpu.memory_space<vmem>>, vector<8x128xbf16>
    %c0_3 = arith.constant 0 : index
    %c0_4 = arith.constant 0 : index
    %2 = vector.load %arg3[%c0_3, %c0_4] : memref<128x256xbf16, #tpu.memory_space<vmem>>, vector<128x256xbf16>
    %cst = arith.constant dense<0.000000e+00> : vector<8x256xf32>
    %3 = tpu.matmul %1, %2, %cst {dimension_numbers = #tpu.dot_dimension_numbers<[1], [0], [0], [1], [0, 0, 1, 1], [], []>} : vector<8x128xbf16>, vector<128x256xbf16>, vector<8x256xf32> -> vector<8x256xf32>
    %4 = arith.truncf %0 : vector<8x128xf32> to vector<8x128xbf16>
    %c0_5 = arith.constant 0 : index
    %c0_6 = arith.constant 0 : index
    %5 = vector.load %arg4[%c0_5, %c0_6] : memref<128x256xbf16, #tpu.memory_space<vmem>>, vector<128x256xbf16>
    %cst_7 = arith.constant dense<0.000000e+00> : vector<8x256xf32>
    %6 = tpu.matmul %4, %5, %cst_7 {dimension_numbers = #tpu.dot_dimension_numbers<[1], [0], [0], [1], [0, 0, 1, 1], [], []>} : vector<8x128xbf16>, vector<128x256xbf16>, vector<8x256xf32> -> vector<8x256xf32>
    %7 = arith.addf %3, %6 : vector<8x256xf32>
    %c0_8 = arith.constant 0 : index
    %c0_9 = arith.constant 0 : index
    %8 = vector.load %arg5[%c0_8, %c0_9] : memref<1x256xf32, #tpu.memory_space<vmem>>, vector<1x256xf32>
    %9 = vector.broadcast %8 : vector<1x256xf32> to vector<8x256xf32>
    %10 = arith.addf %7, %9 : vector<8x256xf32>
    %11 = vector.extract_strided_slice %10 {offsets = [0, 0], sizes = [8, 128], strides = [1, 1]} : vector<8x256xf32> to vector<8x128xf32>
    %cst_10 = arith.constant 0.000000e+00 : f32
    %12 = vector.broadcast %cst_10 : f32 to vector<8x128xf32>
    %13 = arith.subf %12, %11 : vector<8x128xf32>
    %14 = math.exp %13 : vector<8x128xf32>
    %cst_11 = arith.constant 1.000000e+00 : f32
    %15 = vector.broadcast %cst_11 : f32 to vector<8x128xf32>
    %16 = arith.addf %15, %14 : vector<8x128xf32>
    %17 = tpu.reciprocal %16 {approx = true} : vector<8x128xf32> -> vector<8x128xf32>
    %18 = vector.extract_strided_slice %10 {offsets = [0, 128], sizes = [8, 128], strides = [1, 1]} : vector<8x256xf32> to vector<8x128xf32>
    %19 = math.tanh %18 : vector<8x128xf32>
    %20 = arith.subf %19, %0 : vector<8x128xf32>
    %21 = arith.mulf %17, %20 : vector<8x128xf32>
    %22 = arith.addf %0, %21 : vector<8x128xf32>
    %c0_12 = arith.constant 0 : index
    %c0_13 = arith.constant 0 : index
    %23 = vector.load %arg6[%c0_12, %c0_13] : memref<8x128xf32, #tpu.memory_space<vmem>>, vector<8x128xf32>
    tpu.vector_store %arg6[%c0_12, %c0_13], %22 {strides = array<i32>} : memref<8x128xf32, #tpu.memory_space<vmem>>, vector<8x128xf32>,
    return
  }
  func.func @transform_0(%arg0: i32) -> (i32, i32) {
    %c0_i32 = arith.constant 0 : i32
    %c0_i32_0 = arith.constant 0 : i32
    return %arg0, %c0_i32 : i32, i32
  }
  func.func @transform_1(%arg0: i32) -> (i32, i32) {
    %c0_i32 = arith.constant 0 : i32
    %c0_i32_0 = arith.constant 0 : i32
    return %arg0, %c0_i32 : i32, i32
  }
  func.func @transform_2(%arg0: i32) -> (i32, i32) {
    %c0_i32 = arith.constant 0 : i32
    %c0_i32_0 = arith.constant 0 : i32
    %c0_i32_1 = arith.constant 0 : i32
    return %c0_i32, %c0_i32_0 : i32, i32
  }
  func.func @transform_3(%arg0: i32) -> (i32, i32) {
    %c0_i32 = arith.constant 0 : i32
    %c0_i32_0 = arith.constant 0 : i32
    %c0_i32_1 = arith.constant 0 : i32
    return %c0_i32, %c0_i32_0 : i32, i32
  }
  func.func @transform_4(%arg0: i32) -> (i32, i32) {
    %c0_i32 = arith.constant 0 : i32
    %c0_i32_0 = arith.constant 0 : i32
    %c0_i32_1 = arith.constant 0 : i32
    return %c0_i32, %c0_i32_0 : i32, i32
  }
  func.func @transform_5(%arg0: i32) -> (i32, i32) {
    %c0_i32 = arith.constant 0 : i32
    %c0_i32_0 = arith.constant 0 : i32
    return %arg0, %c0_i32 : i32, i32
  }
}

</mosaic_0001>

<bundles_post_ra>
// kernel: tpu_custom_call.1
= control target key start
LH: loop header
LB: loop body
LE: loop exit
PB: predicated region body
PF: predicated region fallthrough
CT: control target
= control target key end

     0   :  { %10 = vsyncpa [#allocation3], 0  ;;  %s704_s0 = inlined_call_operand.hbm [shape: bf16[8,128], index: 0, kind: input, shape index: {}]   ;;  %s705_s1 = inlined_call_operand.hbm [shape: f32[8,128], index: 1, kind: input, shape index: {}]   ;;  %s706_s2 = inlined_call_operand.hbm [shape: bf16[128,256], index: 2, kind: input, shape index: {}]   ;;  %s707_s3 = inlined_call_operand.hbm [shape: bf16[128,256], index: 3, kind: input, shape index: {}]   ;;  %s708_s4 = inlined_call_operand.vmem [shape: f32[1,256], index: 4, kind: input, shape index: {}]   ;;  %s709_s5 = inlined_call_operand.hbm [shape: f32[8,128], index: 5, kind: output, shape index: {}]  }
   0x1   :  { %11 = vsyncpa [#allocation6], 0 }
   0x2   :  { %12 = vsyncpa [#allocation9], 0 }
   0x3   :  { %13 = vsyncpa [#allocation4], 0  ;;  %s603_s18 = smov [#allocation5]   ;;  %s604_s20 = smov [#allocation2]  }
   0x4   :  { %s30_s19 = sshll.u32 %s603_s18, 4  ;;  %s20_s21 = sshll.u32 %s604_s20, 4  ;;  %s31_s19 = int_to_ptr.vmem [resolvable:$true] %s30_s19  ;;  %s21_s21 = int_to_ptr.vmem [resolvable:$true] %s20_s21 }
   0x5   :  { %s485_s24 = scalar_lea.hbm %s705_s1, 128 }
   0x6   :  { %p486_p0 = scmp.ne.s32.totalorder %s705_s1, %s485_s24  ;;  %p489_p1 = scmp.lt.u32.totalorder %s485_s24, %s705_s1 }
   0x8   :  { %p491_p2 = pnand %p489_p1, %p486_p0 }
   0xa   :  { %494 = shalt.err (!%p491_p2)
}
   0xb   :  { %s495_s29 = scalar_lea.vmem %s31_s19, 128  ;;  %p500_p4 = scmp.lt.s32.totalorder %s31_s19, %s31_s19 }
   0xc   :  { %p496_p3 = scmp.ne.s32.totalorder %s31_s19, %s495_s29  ;;  %p501_p5 = scmp.lt.s32.totalorder %s495_s29, %s495_s29 }
   0xe   :  { %p502_p6 = por %p501_p5, %p500_p4 }
  0x10   :  { %p503_p7 = pnand %p502_p6, %p496_p3 }
  0x12   :  { %506 = shalt.err (!%p503_p7)
}
  0x13   :  { %33 = dma.hbm_to_vmem [thread:$0]  %s705_s1, 128, %s31_s19, [#allocation6]  }
  0x14   :  { %s507_s9 = scalar_lea.hbm %s704_s0, 64 }
  0x15   :  { %p508_p8 = scmp.ne.s32.totalorder %s704_s0, %s507_s9  ;;  %p511_p9 = scmp.lt.u32.totalorder %s507_s9, %s704_s0 }
  0x17   :  { %p513_p10 = pnand %p511_p9, %p508_p8 }
  0x19   :  { %516 = shalt.err (!%p513_p10)
}
  0x1a   :  { %s517_s14 = scalar_lea.vmem %s21_s21, 64  ;;  %p522_p12 = scmp.lt.s32.totalorder %s21_s21, %s21_s21 }
  0x1b   :  { %p518_p11 = scmp.ne.s32.totalorder %s21_s21, %s517_s14  ;;  %p523_p13 = scmp.lt.s32.totalorder %s517_s14, %s517_s14 }
  0x1d   :  { %p524_p0 = por %p523_p13, %p522_p12 }
  0x1f   :  { %p525_p1 = pnand %p524_p0, %p518_p11 }
  0x21   :  { %528 = shalt.err (!%p525_p1)
}
  0x22   :  { %23 = dma.hbm_to_vmem [thread:$0]  %s704_s0, 64, %s21_s21, [#allocation3]  }
  0x23   :  { %s605_s16 = smov [#allocation7]   ;;  %s529_s20 = scalar_lea.hbm %s706_s2, 2048 }
  0x24   :  { %s39_s17 = sshll.u32 %s605_s16, 4  ;;  %p530_p2 = scmp.ne.s32.totalorder %s706_s2, %s529_s20  ;;  %s40_s17 = int_to_ptr.vmem [resolvable:$true] %s39_s17 }
  0x25   :  { %p533_p3 = scmp.lt.u32.totalorder %s529_s20, %s706_s2 }
  0x27   :  { %p535_p4 = pnand %p533_p3, %p530_p2 }
  0x29   :  { %538 = shalt.err (!%p535_p4)
}
  0x2a   :  { %s539_s26 = scalar_lea.vmem %s40_s17, 2048  ;;  %p544_p6 = scmp.lt.s32.totalorder %s40_s17, %s40_s17 }
  0x2b   :  { %p540_p5 = scmp.ne.s32.totalorder %s40_s17, %s539_s26  ;;  %p545_p7 = scmp.lt.s32.totalorder %s539_s26, %s539_s26 }
  0x2d   :  { %p546_p8 = por %p545_p7, %p544_p6 }
  0x2f   :  { %p547_p9 = pnand %p546_p8, %p540_p5 }
  0x31   :  { %550 = shalt.err (!%p547_p9)
}
  0x32   :  { %s606_s0 = smov 128   ;;  %s607_s21 = smov 8  }
  0x33   :  { %45 = dma.hbm_to_vmem [thread:$0]  %s706_s2, 2048, %s40_s17, [#allocation6], %s606_s0, %s606_s0, %s607_s21  }
  0x34   :  { %s608_s29 = smov [#allocation8]   ;;  %s551_s8 = scalar_lea.hbm %s707_s3, 2048 }
  0x35   :  { %s51_s30 = sshll.u32 %s608_s29, 4  ;;  %p552_p10 = scmp.ne.s32.totalorder %s707_s3, %s551_s8  ;;  %s52_s30 = int_to_ptr.vmem [resolvable:$true] %s51_s30 }
  0x36   :  { %p555_p11 = scmp.lt.u32.totalorder %s551_s8, %s707_s3 }
  0x38   :  { %p557_p12 = pnand %p555_p11, %p552_p10 }
  0x3a   :  { %560 = shalt.err (!%p557_p12)
}
  0x3b   :  { %s561_s13 = scalar_lea.vmem %s52_s30, 2048  ;;  %p566_p0 = scmp.lt.s32.totalorder %s52_s30, %s52_s30 }
  0x3c   :  { %p562_p13 = scmp.ne.s32.totalorder %s52_s30, %s561_s13  ;;  %p567_p1 = scmp.lt.s32.totalorder %s561_s13, %s561_s13 }
  0x3e   :  { %p568_p2 = por %p567_p1, %p566_p0 }
  0x40   :  { %p569_p3 = pnand %p568_p2, %p562_p13 }
  0x42   :  { %572 = shalt.err (!%p569_p3)
}
  0x43   :  { %57 = dma.hbm_to_vmem [thread:$0]  %s707_s3, 2048, %s52_s30, [#allocation9], %s606_s0, %s606_s0, %s607_s21  }
  0x44   :  { %595 = dma.done.wait [#allocation3], 64  }
  0x45   :  { %596 = vsyncadd [#allocation3], 4294967232 }
  0x46   :  { %597 = dma.done.wait [#allocation6], 2176  }
  0x47   :  { %598 = vsyncadd [#allocation6], 4294965120 }
  0x48   :  { %599 = dma.done.wait [#allocation9], 2048  }
  0x49   :  { %600 = vsyncadd [#allocation9], 4294965248  ;;  %v609_v0 = vmov 0   ;;  %v431_v1 = vld [vmem:[#allocation8 + $0x4] ss:$8 sps:$4 sm:$0xff]   ;;  %v73_v33 = vld [vmem:[#allocation5] sm:$0xff]  ;;  %v352_v36 = vlaneseq }
  0x4a   :  { %220 = vmatprep.mubr.bf16.mxu0 %v609_v0  ;;  %341 = vmatprep.mubr.bf16.mxu1 %v609_v0  ;;  %v433_v2 = vld [vmem:[#allocation7 + $0x4] ss:$8 sps:$4 sm:$0xff]   ;;  %v435_v3 = vld [vmem:[#allocation8] ss:$8 sps:$4 sm:$0xff]   ;;  %v437_v5 = vld [vmem:[#allocation8 + $0x14] ss:$8 sps:$4 sm:$0xff]   ;;  %v91_v34 = vpack.c.bf16 %v73_v33, %v73_v33 }
  0x4b   :  { %188 = vmatprep.subr.bf16.mxu0 %v431_v1  ;;  %v436_v4 = vld [vmem:[#allocation7] ss:$8 sps:$4 sm:$0xff]   ;;  %309 = vmatprep.subr.bf16.mxu1 %v433_v2  ;;  %v439_v6 = vld [vmem:[#allocation7 + $0x14] ss:$8 sps:$4 sm:$0xff]   ;;  %v441_v7 = vld [vmem:[#allocation8 + $0x10] ss:$8 sps:$4 sm:$0xff]  }
  0x4c   :  { %189 = vmatpush1.bf16.msra.mxu0 %v435_v3  ;;  %310 = vmatpush1.bf16.msra.mxu1 %v436_v4  ;;  %v442_v8 = vld [vmem:[#allocation7 + $0x10] ss:$8 sps:$4 sm:$0xff]   ;;  %v443_v9 = vld [vmem:[#allocation8 + $0x24] ss:$8 sps:$4 sm:$0xff]   ;;  %v447_v11 = vld [vmem:[#allocation8 + $0x20] ss:$8 sps:$4 sm:$0xff]  }
  0x4d   :  { %190 = vmatprep.subr.bf16.mxu0 %v437_v5  ;;  %311 = vmatprep.subr.bf16.mxu1 %v439_v6  ;;  %v445_v10 = vld [vmem:[#allocation7 + $0x24] ss:$8 sps:$4 sm:$0xff]   ;;  %v448_v12 = vld [vmem:[#allocation7 + $0x20] ss:$8 sps:$4 sm:$0xff]   ;;  %v449_v13 = vld [vmem:[#allocation8 + $0x34] ss:$8 sps:$4 sm:$0xff]  }
  0x4e   :  { %v451_v14 = vld [vmem:[#allocation7 + $0x34] ss:$8 sps:$4 sm:$0xff]   ;;  %v453_v15 = vld [vmem:[#allocation8 + $0x30] ss:$8 sps:$4 sm:$0xff]   ;;  %v455_v17 = vld [vmem:[#allocation8 + $0x44] ss:$8 sps:$4 sm:$0xff]  }
  0x4f   :  { %v454_v16 = vld [vmem:[#allocation7 + $0x30] ss:$8 sps:$4 sm:$0xff]   ;;  %v457_v18 = vld [vmem:[#allocation7 + $0x44] ss:$8 sps:$4 sm:$0xff]   ;;  %v459_v19 = vld [vmem:[#allocation8 + $0x40] ss:$8 sps:$4 sm:$0xff]  }
  0x50   :  { %191 = vmatpush1.bf16.msra.mxu0 %v441_v7  ;;  %312 = vmatpush1.bf16.msra.mxu1 %v442_v8  ;;  %v460_v20 = vld [vmem:[#allocation7 + $0x40] ss:$8 sps:$4 sm:$0xff]   ;;  %v461_v21 = vld [vmem:[#allocation8 + $0x54] ss:$8 sps:$4 sm:$0xff]   ;;  %v465_v23 = vld [vmem:[#allocation8 + $0x50] ss:$8 sps:$4 sm:$0xff]  }
  0x51   :  { %192 = vmatprep.subr.bf16.mxu0 %v443_v9  ;;  %313 = vmatprep.subr.bf16.mxu1 %v445_v10  ;;  %v463_v22 = vld [vmem:[#allocation7 + $0x54] ss:$8 sps:$4 sm:$0xff]   ;;  %v466_v24 = vld [vmem:[#allocation7 + $0x50] ss:$8 sps:$4 sm:$0xff]   ;;  %v467_v25 = vld [vmem:[#allocation8 + $0x64] ss:$8 sps:$4 sm:$0xff]  }
  0x52   :  { %v469_v26 = vld [vmem:[#allocation7 + $0x64] ss:$8 sps:$4 sm:$0xff]   ;;  %v471_v27 = vld [vmem:[#allocation8 + $0x60] ss:$8 sps:$4 sm:$0xff]   ;;  %v473_v29 = vld [vmem:[#allocation8 + $0x74] ss:$8 sps:$4 sm:$0xff]  }
  0x53   :  { %v472_v28 = vld [vmem:[#allocation7 + $0x60] ss:$8 sps:$4 sm:$0xff]   ;;  %v475_v30 = vld [vmem:[#allocation7 + $0x74] ss:$8 sps:$4 sm:$0xff]   ;;  %v477_v31 = vld [vmem:[#allocation8 + $0x70] ss:$8 sps:$4 sm:$0xff]  }
  0x54   :  { %193 = vmatpush1.bf16.msra.mxu0 %v447_v11  ;;  %314 = vmatpush1.bf16.msra.mxu1 %v448_v12  ;;  %v478_v32 = vld [vmem:[#allocation7 + $0x70] ss:$8 sps:$4 sm:$0xff]   ;;  %v74_v35 = vld [vmem:[#allocation2] sm:$0xf]  ;;  %v353_v37 = vshrl.u32 %v352_v36, 7 }
  0x55   :  { %194 = vmatprep.subr.bf16.mxu0 %v449_v13  ;;  %315 = vmatprep.subr.bf16.mxu1 %v451_v14  ;;  %v350_v39 = vld [vmem:[%s708_s4] sm:$0x3]  ;;  %s610_s4 = smov [#allocation10]  }
  0x56   :  { %v354_v38 = vsub.s32 0, %v353_v37  ;;  %v358_v53 = vsub.s32 1, %v353_v37  ;;  %s380_s15 = sshll.u32 %s610_s4, 4  ;;  %s381_s15 = int_to_ptr.vmem [resolvable:$true] %s380_s15 }
  0x57   :  { %s573_s16 = scalar_lea.vmem %s381_s15, 128  ;;  %p578_p5 = scmp.lt.s32.totalorder %s381_s15, %s381_s15 }
  0x58   :  { %195 = vmatpush1.bf16.msra.mxu0 %v453_v15  ;;  %316 = vmatpush1.bf16.msra.mxu1 %v454_v16  ;;  %v355_v40 = vrot.slane %v350_v39, %v354_v38  ;;  %v359_v55 = vrot.slane %v350_v39, %v358_v53  ;;  %p574_p4 = scmp.ne.s32.totalorder %s381_s15, %s573_s16  ;;  %p579_p6 = scmp.lt.s32.totalorder %s573_s16, %s573_s16 }
  0x59   :  { %196 = vmatprep.subr.bf16.mxu0 %v455_v17  ;;  %317 = vmatprep.subr.bf16.mxu1 %v457_v18 }
  0x5a   :  { %p580_p7 = por %p579_p6, %p578_p5 }
  0x5c   :  { %197 = vmatpush1.bf16.msra.mxu0 %v459_v19  ;;  %318 = vmatpush1.bf16.msra.mxu1 %v460_v20  ;;  %p581_p8 = pnand %p580_p7, %p574_p4 }
  0x5d   :  { %198 = vmatprep.subr.bf16.mxu0 %v461_v21  ;;  %319 = vmatprep.subr.bf16.mxu1 %v463_v22 }
  0x60   :  { %199 = vmatpush1.bf16.msra.mxu0 %v465_v23  ;;  %320 = vmatpush1.bf16.msra.mxu1 %v466_v24 }
  0x61   :  { %200 = vmatprep.subr.bf16.mxu0 %v467_v25  ;;  %321 = vmatprep.subr.bf16.mxu1 %v469_v26 }
  0x64   :  { %201 = vmatpush1.bf16.msra.mxu0 %v471_v27  ;;  %322 = vmatpush1.bf16.msra.mxu1 %v472_v28 }
  0x65   :  { %202 = vmatprep.subr.bf16.mxu0 %v473_v29  ;;  %323 = vmatprep.subr.bf16.mxu1 %v475_v30 }
  0x68   :  { %203 = vmatpush1.bf16.msra.mxu0 %v477_v31  ;;  %324 = vmatpush1.bf16.msra.mxu1 %v478_v32 }
  0x6b   :  { %221 = vmatmul.mubr.bf16.vlgmr.msra.gmra.mrb[0].mxu0 %v91_v34  ;;  %342 = vmatmul.mubr.bf16.vlgmr.msra.gmra.mrb[0].mxu1 %v74_v35 }
 0x13e   :  { %v222_v41 = vpop.f32.mrb[0].mxu0  ;;  %v343_v42 = vpop.f32.mrb[0].mxu1 }
 0x13f   :  { %v344_v43 = vadd.f32 %v343_v42, %v222_v41  ;;  %v224_v44 = vpop.f32.mrb[1].mxu0  ;;  %v345_v45 = vpop.f32.mrb[1].mxu1 }
 0x140   :  { %v346_v46 = vadd.f32 %v345_v45, %v224_v44  ;;  %v226_v47 = vpop.f32.mrb[2].mxu0  ;;  %v347_v48 = vpop.f32.mrb[2].mxu1 }
 0x141   :  { %v362_v49 = vadd.f32 %v355_v40, %v344_v43  ;;  %v227_v50 = vpop.f32.mrb[3].mxu0  ;;  %v348_v51 = vpop.f32.mrb[3].mxu1 }
 0x142   :  { %v363_v56 = vadd.f32 %v359_v55, %v346_v46 }
 0x143   :  { %v364_v52 = vsub.f32 0.0, %v362_v49 }
 0x145   :  { %v365_v54 = vmul.f32 1.442695, %v364_v52 }
 0x147   :  { %479 = vpow2.f32 %v365_v54 }
 0x148   :  { %481 = vtanh.f32 %v363_v56 }
 0x151   :  { %v480_v57 = vpop.eup %479 }
 0x152   :  { %v367_v58 = vadd.f32 1.0, %v480_v57  ;;  %v482_v59 = vpop.eup %481 }
 0x153   :  { %v370_v60 = vsub.f32 %v482_v59, %v73_v33 }
 0x154   :  { %483 = vrcp.f32 %v367_v58 }
 0x15e   :  { %v484_v61 = vpop.eup %483 }
 0x15f   :  { %v371_v62 = vmul.f32 %v484_v61, %v370_v60 }
 0x161   :  { %v372_v63 = vadd.f32 %v371_v62, %v73_v33 }
 0x163   :  { %373 = vst [vmem:[#allocation10] sm:$0xff] %v372_v63 }
 0x164   :  { %584 = shalt.err (!%p581_p8)
}
 0x165   :  { %s585_s19 = scalar_lea.hbm %s709_s5, 128 }
 0x166   :  { %p586_p9 = scmp.ne.s32.totalorder %s709_s5, %s585_s19  ;;  %p589_p10 = scmp.lt.u32.totalorder %s585_s19, %s709_s5 }
 0x168   :  { %p591_p11 = pnand %p589_p10, %p586_p9 }
 0x16a   :  { %594 = shalt.err (!%p591_p11)
}
 0x16b   :  { %383 = dma.vmem_to_hbm [thread:$0]  %s381_s15, 128, %s709_s5, [#allocation4]  }
 0x16c   :  { %601 = dma.done.wait [#allocation4], 128  }
 0x16d   :  { %602 = vsyncadd [#allocation4], 4294967168 }
 0x16e   :  { %387 = vsyncpa [#allocation3], 1 }
 0x16f   :  { %388 = vsyncpa [#allocation6], 1 }
 0x170   :  { %389 = vsyncpa [#allocation9], 1 }
 0x171   :  { %390 = vsyncpa [#allocation4], 1 }

</bundles_post_ra>
